<compile_context>
chip_gen: v6e
topology: v6e:2x2x1
jax: 0.10.0
libtpu: 0.0.40
codegen_flags: <defaults>
</compile_context>

<pallas_src>
import functools

import jax
import jax.numpy as jnp
from jax.experimental import pallas as pl
from jax.experimental.pallas import tpu as pltpu


def _group_mlp_kernel(x_ref, w1_ref, w2_ref, o_ref):
    # x_ref:  (bt, gt*in_dim)             streamed batch tile (bf16 or f32)
    # w1_ref: (1, gt*in_dim, gt*hidden)   block-diagonal fused layer-1 weights
    # w2_ref: (1, gt*hidden, gt*out_dim)  block-diagonal fused layer-2 weights
    # o_ref:  (bt, gt*out_dim)            lane-dense output slab
    h = jnp.dot(x_ref[...], w1_ref[0], preferred_element_type=jnp.float32)
    h = jnp.maximum(h, 0.0)  # ReLU in f32 (safe on v5e: no bf16 VPU)
    o = jnp.dot(h.astype(w2_ref.dtype), w2_ref[0],
                preferred_element_type=jnp.float32)
    o_ref[...] = o.astype(o_ref.dtype)


def _round_up(v, m):
    return ((v + m - 1) // m) * m


def _block_diag_tiled(w, gt):
    """(num, din, dout) -> (num//gt, gt*din, gt*dout) per-tile block-diagonal.

    Off-diagonal blocks are exact zeros, so the fused dense matmul reproduces
    the per-group bmm bit-for-bit (up to f32 accumulation order).
    """
    num, din, dout = w.shape
    n_gt = num // gt
    wt = w.reshape(n_gt, gt, din, dout)
    eye = jnp.eye(gt, dtype=w.dtype)
    bd = jnp.einsum("ngio,gh->ngiho", wt, eye)  # (n_gt, gt, din, gt, dout)
    return bd.reshape(n_gt, gt * din, gt * dout)


def _default_group_block(num, in_dim, hidden, out_dim):
    if num <= 8:
        return num
    # Bound block-diagonal weight/FLOP inflation (num^2 growth) while keeping
    # block dims TPU-tileable (last two block dims must be multiples of
    # (8, 128) unless they span the full array dimension).
    for gt in range(8, 0, -1):
        if (num % gt == 0 and (gt * in_dim) % 128 == 0
                and (gt * hidden) % 128 == 0 and (gt * out_dim) % 128 == 0):
            return gt
    # TODO(synk): for awkward per-group dims fall back to full fusion; a padded
    # group tile would bound inflation without this fallback.
    return num


def fuse_group_weights(w1, w2, *, group_block=None, compute_dtype=jnp.bfloat16):
    """Fuse group weights into per-tile block-diagonal form (done once)."""
    num, in_dim, hidden = w1.shape
    out_dim = w2.shape[-1]
    if group_block is None:
        group_block = _default_group_block(num, in_dim, hidden, out_dim)
    assert num % group_block == 0
    w1_bd = _block_diag_tiled(w1, group_block).astype(compute_dtype)
    w2_bd = _block_diag_tiled(w2, group_block).astype(compute_dtype)
    return w1_bd, w2_bd


@functools.partial(jax.jit, static_argnames=("block_b",))
def group_mlp_forward(x, w1_bd, w2_bd, *, block_b=4096):
    """x: (batch, num, in_dim); w1_bd: (n_gt, gt*in_dim, gt*hidden);
    w2_bd: (n_gt, gt*hidden, gt*out_dim). Returns (batch, num, out_dim)."""
    batch, num, in_dim = x.shape
    n_gt, gtdi, gth = w1_bd.shape
    gtdo = w2_bd.shape[-1]
    gt = gtdi // in_dim
    assert n_gt * gt == num
    out_dim = gtdo // gt

    compute_dtype = w1_bd.dtype
    out_dtype = x.dtype
    ic = jnp.dtype(compute_dtype).itemsize
    io = jnp.dtype(out_dtype).itemsize

    # ---- batch-tile selection against an explicit VMEM budget -------------
    # Per-step VMEM: double-buffered x/out tiles + f32 intermediates + weights.
    per_row = 2 * gtdi * ic + 2 * gtdo * io + 4 * gth + 4 * gtdo
    w_bufs = 1 if n_gt == 1 else 2
    w_bytes = (gtdi * gth + gth * gtdo) * ic * w_bufs
    vmem_budget = 40 * 1024 * 1024                 # fits v5e / v6e / v7x
    bt_vmem_cap = max(8, ((vmem_budget - w_bytes) // per_row) // 8 * 8)

    bt = max(8, min(block_b, _round_up(batch, 8), bt_vmem_cap))
    n_bt = -(-batch // bt)
    if batch > 8:
        n_bt = max(n_bt, 2)     # >= 2 batch steps: v7x megacore can shard
    bt = max(8, _round_up(-(-batch // n_bt), 8))
    padded = n_bt * bt

    # Flatten trailing dims: contiguous reshape, no transpose / HBM round-trip.
    x_flat = x.reshape(batch, num * in_dim).astype(compute_dtype)
    if padded != batch:
        x_flat = jnp.pad(x_flat, ((0, padded - batch), (0, 0)))

    vmem_limit = int(min(max(per_row * bt * 1.5 + w_bytes, 32 * 1024 * 1024),
                         56 * 1024 * 1024))

    cost = pl.CostEstimate(
        flops=2 * padded * n_gt * (gtdi * gth + gth * gtdo),
        transcendentals=0,
        bytes_accessed=(padded * num * in_dim * ic
                        + n_gt * (gtdi * gth + gth * gtdo) * ic
                        + padded * num * out_dim * io),
    )

    # Weights are grid-invariant when n_gt == 1 -> single-buffer them.
    w_mode = pl.Buffered(1) if n_gt == 1 else None

    out_flat = pl.pallas_call(
        _group_mlp_kernel,
        out_shape=jax.ShapeDtypeStruct((padded, num * out_dim), out_dtype),
        grid_spec=pl.GridSpec(
            grid=(n_gt, n_bt),                       # batch innermost
            in_specs=[
                pl.BlockSpec((bt, gtdi), lambda g, b: (b, g)),
                pl.BlockSpec((1, gtdi, gth), lambda g, b: (g, 0, 0),
                             pipeline_mode=w_mode),
                pl.BlockSpec((1, gth, gtdo), lambda g, b: (g, 0, 0),
                             pipeline_mode=w_mode),
            ],
            out_specs=pl.BlockSpec((bt, gtdo), lambda g, b: (b, g)),
        ),
        compiler_params=pltpu.CompilerParams(
            dimension_semantics=("arbitrary", "parallel"),
            vmem_limit_bytes=vmem_limit,
        ),
        cost_estimate=cost,
    )(x_flat, w1_bd, w2_bd)

    return out_flat[:batch].reshape(batch, num, out_dim)


def init_group_mlp_params(key, in_dim, out_dim, num, hidden=128,
                          dtype=jnp.float32):
    """Mirrors GroupLinearLayer init: 0.01 * randn(num, din, dout)."""
    k1, k2 = jax.random.split(key)
    w1 = 0.01 * jax.random.normal(k1, (num, in_dim, hidden), dtype=dtype)
    w2 = 0.01 * jax.random.normal(k2, (num, hidden, out_dim), dtype=dtype)
    return w1, w2


def _reference_forward(x, w1, w2):
    # Pure-JAX reference of GroupMLP.forward (per-group bmm).
    h = jnp.einsum("bgi,gih->bgh", x, w1)
    h = jnp.maximum(h, 0.0)
    return jnp.einsum("bgh,gho->bgo", h, w2)


if __name__ == "__main__":
    # Shapes consistent with the module: x is (batch, num_groups, in_dim);
    # hidden is hardcoded to 128 inside GroupMLP. batch=24 exercises batch
    # padding and a >=2-step batch grid; the demo is tiny so wall clock here
    # is launch-overhead bound (steady-state tuning targets large batch).
    batch, num, in_dim, out_dim, hidden = 24, 4, 16, 32, 128

    key = jax.random.PRNGKey(0)
    kx, kp = jax.random.split(key)
    x = jax.random.normal(kx, (batch, num, in_dim), dtype=jnp.float32)
    w1, w2 = init_group_mlp_params(kp, in_dim, out_dim, num, hidden=hidden)
    ref = _reference_forward(x, w1, w2)

    # f32 path: exactness check of the block-diagonal fusion / batch tiling.
    w1_f32, w2_f32 = fuse_group_weights(w1, w2, compute_dtype=jnp.float32)
    out_f32 = jax.block_until_ready(group_mlp_forward(x, w1_f32, w2_f32))
    assert out_f32.shape == (batch, num, out_dim)
    assert jnp.allclose(out_f32, ref, atol=1e-5, rtol=1e-5)

    # bf16-streaming path (default): halves HBM bytes; accumulation stays f32.
    w1_bf, w2_bf = fuse_group_weights(w1, w2)   # bfloat16 compute dtype
    out_bf = jax.block_until_ready(group_mlp_forward(x, w1_bf, w2_bf))
    assert out_bf.shape == (batch, num, out_dim)
    assert jnp.allclose(out_bf, ref, atol=2e-3, rtol=2e-2)

    print("KERNEL_OK")
</pallas_src>

<mosaic_0001>
module attributes {stable_mosaic.version = 11 : i64} {
  func.func @_group_mlp_kernel(%arg0: i32, %arg1: i32, %arg2: memref<16x64xf32, #tpu.memory_space<vmem>>, %arg3: memref<1x64x512xf32, #tpu.memory_space<vmem>>, %arg4: memref<1x512x128xf32, #tpu.memory_space<vmem>>, %arg5: memref<16x128xf32, #tpu.memory_space<vmem>>) attributes {dimension_semantics = [#tpu.dimension_semantics<arbitrary>, #tpu.dimension_semantics<parallel>], iteration_bounds = array<i64: 1, 2>, scalar_prefetch = 0 : i64, scratch_operands = 0 : i64, tpu.core_type = #tpu.core_type<tc>, window_params = [{transform_indices = @transform_0, window_bounds = array<i64: 16, 64>}, {pipeline_mode = #tpu.pipeline_mode<synchronous>, transform_indices = @transform_1, window_bounds = array<i64: 1, 64, 512>}, {pipeline_mode = #tpu.pipeline_mode<synchronous>, transform_indices = @transform_2, window_bounds = array<i64: 1, 512, 128>}, {transform_indices = @transform_3, window_bounds = array<i64: 16, 128>}]} {
    %c0 = arith.constant 0 : index
    %c0_0 = arith.constant 0 : index
    %0 = vector.load %arg2[%c0, %c0_0] : memref<16x64xf32, #tpu.memory_space<vmem>>, vector<16x64xf32>
    %c0_1 = arith.constant 0 : index
    %c0_2 = arith.constant 0 : index
    %c0_3 = arith.constant 0 : index
    %1 = vector.load %arg3[%c0_1, %c0_2, %c0_3] : memref<1x64x512xf32, #tpu.memory_space<vmem>>, vector<1x64x512xf32>
    %2 = vector.shape_cast %1 : vector<1x64x512xf32> to vector<64x512xf32>
    %cst = arith.constant dense<0.000000e+00> : vector<16x512xf32>
    %3 = tpu.matmul %0, %2, %cst {dimension_numbers = #tpu.dot_dimension_numbers<[1], [0], [0], [1], [0, 0, 1, 1], [], []>} : vector<16x64xf32>, vector<64x512xf32>, vector<16x512xf32> -> vector<16x512xf32>
    %cst_4 = arith.constant 0.000000e+00 : f32
    %4 = vector.broadcast %cst_4 : f32 to vector<16x512xf32>
    %5 = arith.maximumf %3, %4 : vector<16x512xf32>
    %c0_5 = arith.constant 0 : index
    %c0_6 = arith.constant 0 : index
    %c0_7 = arith.constant 0 : index
    %6 = vector.load %arg4[%c0_5, %c0_6, %c0_7] : memref<1x512x128xf32, #tpu.memory_space<vmem>>, vector<1x512x128xf32>
    %7 = vector.shape_cast %6 : vector<1x512x128xf32> to vector<512x128xf32>
    %cst_8 = arith.constant dense<0.000000e+00> : vector<16x128xf32>
    %8 = tpu.matmul %5, %7, %cst_8 {dimension_numbers = #tpu.dot_dimension_numbers<[1], [0], [0], [1], [0, 0, 1, 1], [], []>} : vector<16x512xf32>, vector<512x128xf32>, vector<16x128xf32> -> vector<16x128xf32>
    %c0_9 = arith.constant 0 : index
    %c0_10 = arith.constant 0 : index
    %9 = vector.load %arg5[%c0_9, %c0_10] : memref<16x128xf32, #tpu.memory_space<vmem>>, vector<16x128xf32>
    tpu.vector_store %arg5[%c0_9, %c0_10], %8 {strides = array<i32>} : memref<16x128xf32, #tpu.memory_space<vmem>>, vector<16x128xf32>,
    return
  }
  func.func @transform_0(%arg0: i32, %arg1: i32) -> (i32, i32) {
    %c0_i32 = arith.constant 0 : i32
    return %arg1, %arg0 : i32, i32
  }
  func.func @transform_1(%arg0: i32, %arg1: i32) -> (i32, i32, i32) {
    %c0_i32 = arith.constant 0 : i32
    %c0_i32_0 = arith.constant 0 : i32
    %c0_i32_1 = arith.constant 0 : i32
    return %arg0, %c0_i32, %c0_i32_0 : i32, i32, i32
  }
  func.func @transform_2(%arg0: i32, %arg1: i32) -> (i32, i32, i32) {
    %c0_i32 = arith.constant 0 : i32
    %c0_i32_0 = arith.constant 0 : i32
    %c0_i32_1 = arith.constant 0 : i32
    return %arg0, %c0_i32, %c0_i32_0 : i32, i32, i32
  }
  func.func @transform_3(%arg0: i32, %arg1: i32) -> (i32, i32) {
    %c0_i32 = arith.constant 0 : i32
    return %arg1, %arg0 : i32, i32
  }
}

</mosaic_0001>

<bundles_post_ra>
// kernel: group_mlp_forward.1
= control target key start
LH: loop header
LB: loop body
LE: loop exit
PB: predicated region body
PF: predicated region fallthrough
CT: control target
= control target key end

     0   :  { %8 = vsyncpa [#allocation3], 0  ;;  %s1132_s0 = inlined_call_operand.vmem [shape: f32[32,64], index: 0, kind: input, shape index: {}]   ;;  %s1133_s1 = inlined_call_operand.hbm [shape: f32[1,64,512], index: 1, kind: input, shape index: {}]   ;;  %s1134_s2 = inlined_call_operand.hbm [shape: f32[1,512,128], index: 2, kind: input, shape index: {}]   ;;  %s1135_s3 = inlined_call_operand.vmem [shape: f32[32,128], index: 3, kind: output, shape index: {}]  }
   0x1   :  { %9 = vsyncpa [#allocation5], 0  ;;  %s1030_s12 = smov 0   ;;  %s1032_s13 = smov 0  }
   0x2   :  { %s1034_s14 = smov 0  }
   0x3 LB: > { %s774_s15 = sadd.s32 4294967295, %s1001_s14   ;;  %s24_s16 = sadd.s32 1, %s997_s13  ;;  %s1001_s14 = sphi %s1034_s14, %s15_s14   ;;  %s997_s13 = sphi %s1032_s13, %s1141_s13   ;;  %s993_s12 = sphi %s1030_s12, %s1140_s12  }
   0x4   : > { %p25_p0 = scmp.ge.s32.totalorder %s24_s16, 2  ;;  %p776_p1 = scmp.ge.s32.totalorder %s1001_s14, 1 }
   0x5   : > { %p140_p2 = scmp.lt.s32.totalorder %s1001_s14, 3  ;;  %p1055_p4 = scmp.eq.s32.totalorder %s774_s15, 0 }
   0x6   : > { %s1143_s16 = smov (%p25_p0, %s24_s16), 0  ;;  %s1003_s19 = smov [#allocation2]  }
   0x7   : > { %p1051_p3 = pnand %p776_p1, %p140_p2  ;;  %s155_s20 = sshll.u32 %s1003_s19, 4  ;;  %s156_s20 = int_to_ptr.vmem [resolvable:$true] %s155_s20 }
   0x8   : > { %s1004_s22 = smov [#allocation4]   ;;  %s930_s24 = scalar_lea.vmem %s156_s20, 4096 }
   0x9   : > { %p877_p5 = pneg %p1051_p3  ;;  %s171_s23 = sshll.u32 %s1004_s22, 4  ;;  %s172_s23 = int_to_ptr.vmem [resolvable:$true] %s171_s23 }
   0xa   : > { %p931_p8 = scmp.ne.s32.totalorder %s156_s20, %s930_s24  ;;  %p938_p11 = scmp.lt.s32.totalorder %s156_s20, %s156_s20 }
   0xb   : > { %p1063_p6 = pnand %p1055_p4, %p877_p5  ;;  %p939_p12 = scmp.lt.s32.totalorder %s930_s24, %s930_s24 }
   0xd   : > { %p921_p7 = pneg %p1063_p6  ;;  %p940_p13 = por %p939_p12, %p938_p11 }
   0xf   : > { %p933_p9 = pnand %p931_p8, %p921_p7 }
  0x11   : > { %p934_p10 = pneg %p933_p9 }
  0x13   : > { %p941_p0 = pnand %p940_p13, %p934_p10 }
  0x15   : > { %944 = shalt.err (!%p941_p0)
}
  0x16   : > { %s1005_s25 = smov 512   ;;  %s1006_s26 = smov 32  }
  0x17   : > { %880 = dma.hbm_to_vmem [thread:$0]  (!%p1063_p6), %s1133_s1, 4096, %s156_s20, [#allocation3], %s1005_s25, %s1005_s25, %s1006_s26  }
  0x18   : > { %s956_s29 = scalar_lea.vmem %s172_s23, 8192  ;;  %p964_p8 = scmp.lt.s32.totalorder %s172_s23, %s172_s23 }
  0x19   : > { %p957_p1 = scmp.ne.s32.totalorder %s172_s23, %s956_s29  ;;  %p965_p9 = scmp.lt.s32.totalorder %s956_s29, %s956_s29 }
  0x1b   : > { %p959_p2 = pnand %p957_p1, %p921_p7  ;;  %p966_p11 = por %p965_p9, %p964_p8 }
  0x1d   : > { %p960_p5 = pneg %p959_p2 }
  0x1f   : > { %p967_p10 = pnand %p966_p11, %p960_p5 }
  0x21   : > { %970 = shalt.err (!%p967_p10)
}
  0x22   : > { %s1007_s30 = smov 128   ;;  %s1008_s4 = smov 8  }
  0x23   : > { %883 = dma.hbm_to_vmem [thread:$0]  (!%p1063_p6), %s1134_s2, 8192, %s172_s23, [#allocation5], %s1007_s30, %s1007_s30, %s1008_s4  }
  0x24   : > { %199 = sbr.rel (%p1051_p3) target bundleno = 464 (0x1d0), region = 32 }
  0x29   : > { %984 = dma.done.wait (%p1055_p4), [#allocation3], 4096  }
  0x2a   : > { %986 = vsyncadd (%p1055_p4), [#allocation3], 4294963200 }
  0x2b   : > { %988 = dma.done.wait (%p1055_p4), [#allocation5], 8192  }
  0x2c   : > { %990 = vsyncadd (%p1055_p4), [#allocation5], 4294959104  ;;  %v1009_v0 = vmov 0.0   ;;  %s783_s7 = sshll.u32 %s993_s12, 1  ;;  %v282_v1 = vld [vmem:[#allocation2 + $0xe8] sm:$0xff]  ;;  %v284_v2 = vld [vmem:[#allocation2 + $0xf8] sm:$0xff] }
  0x2d   : > { %356 = vmatprep.mubr.f32.mxu0 %v1009_v0  ;;  %433 = vmatprep.mubr.f32.mxu1 %v1009_v0  ;;  %v281_v3 = vld [vmem:[#allocation2 + $0xe0] sm:$0xff]  ;;  %p1098_p3 = scmp.lt.s32.totalorder %s783_s7, 3  ;;  %v283_v4 = vld [vmem:[#allocation2 + $0xf0] sm:$0xff]  ;;  %v278_v5 = vld [vmem:[#allocation2 + $0xc8] sm:$0xff]  ;;  %vm285_vm0 = vcmask 523264  }
  0x2e   : > { %308 = vmatprep.subr.mxu0 %v282_v1  ;;  %385 = vmatprep.subr.mxu1 %v284_v2  ;;  %v280_v6 = vld [vmem:[#allocation2 + $0xd8] sm:$0xff]  ;;  %v277_v7 = vld [vmem:[#allocation2 + $0xc0] sm:$0xff]  ;;  %v279_v8 = vld [vmem:[#allocation2 + $0xd0] sm:$0xff] }
  0x2f   : > { %309 = vmatpush1.msra.mxu0 %v281_v3  ;;  %386 = vmatpush1.msra.mxu1 %v283_v4  ;;  %v274_v9 = vld [vmem:[#allocation2 + $0xa8] sm:$0xff]  ;;  %v276_v10 = vld [vmem:[#allocation2 + $0xb8] sm:$0xff]  ;;  %v273_v11 = vld [vmem:[#allocation2 + $0xa0] sm:$0xff]  ;;  %s1145_s7 = smov (!%p1098_p3, %s783_s7), 3 }
  0x30   : > { %310 = vmatprep.subr.mxu0 %v278_v5  ;;  %387 = vmatprep.subr.mxu1 %v280_v6  ;;  %v275_v12 = vld [vmem:[#allocation2 + $0xb0] sm:$0xff]  ;;  %v270_v13 = vld [vmem:[#allocation2 + $0x88] sm:$0xff]  ;;  %v272_v14 = vld [vmem:[#allocation2 + $0x98] sm:$0xff]  ;;  %s784_s9 = sshll.u32 %s1145_s7, 3 }
  0x31   : > { %311 = vmatpush1.msra.mxu0 %v277_v7  ;;  %388 = vmatpush1.msra.mxu1 %v279_v8  ;;  %v269_v15 = vld [vmem:[#allocation2 + $0x80] sm:$0xff]  ;;  %v271_v16 = vld [vmem:[#allocation2 + $0x90] sm:$0xff]  ;;  %v266_v17 = vld [vmem:[#allocation2 + $0x68] sm:$0xff]  ;;  %s240_s12 = scalar_lea.vmem %s1132_s0, %s784_s9  ;;  %s249_s18 = scalar_lea.vmem %s1135_s3, %s784_s9 }
  0x32   : > { %312 = vmatprep.subr.mxu0 %v274_v9  ;;  %389 = vmatprep.subr.mxu1 %v276_v10  ;;  %v268_v18 = vld [vmem:[#allocation2 + $0x78] sm:$0xff]  ;;  %v265_v19 = vld [vmem:[#allocation2 + $0x60] sm:$0xff]  ;;  %v267_v20 = vld [vmem:[#allocation2 + $0x70] sm:$0xff] }
  0x33   : > { %313 = vmatpush1.msra.mxu0 %v273_v11  ;;  %390 = vmatpush1.msra.mxu1 %v275_v12  ;;  %v262_v21 = vld [vmem:[#allocation2 + $0x48] sm:$0xff]  ;;  %v264_v22 = vld [vmem:[#allocation2 + $0x58] sm:$0xff]  ;;  %v261_v23 = vld [vmem:[#allocation2 + $0x40] sm:$0xff] }
  0x34   : > { %314 = vmatprep.subr.mxu0 %v270_v13  ;;  %391 = vmatprep.subr.mxu1 %v272_v14  ;;  %v263_v24 = vld [vmem:[#allocation2 + $0x50] sm:$0xff]  ;;  %v258_v25 = vld [vmem:[#allocation2 + $0x28] sm:$0xff]  ;;  %v260_v26 = vld [vmem:[#allocation2 + $0x38] sm:$0xff] }
  0x35   : > { %315 = vmatpush1.msra.mxu0 %v269_v15  ;;  %392 = vmatpush1.msra.mxu1 %v271_v16  ;;  %v257_v27 = vld [vmem:[#allocation2 + $0x20] sm:$0xff]  ;;  %v259_v28 = vld [vmem:[#allocation2 + $0x30] sm:$0xff]  ;;  %v254_v29 = vld [vmem:[#allocation2 + $0x8] sm:$0xff] }
  0x36   : > { %316 = vmatprep.subr.mxu0 %v266_v17  ;;  %393 = vmatprep.subr.mxu1 %v268_v18  ;;  %v256_v30 = vld [vmem:[#allocation2 + $0x18] sm:$0xff]  ;;  %v253_v31 = vld [vmem:[#allocation2] sm:$0xff]  ;;  %v255_v32 = vld [vmem:[#allocation2 + $0x10] sm:$0xff] }
  0x37   : > { %317 = vmatpush1.msra.mxu0 %v265_v19  ;;  %394 = vmatpush1.msra.mxu1 %v267_v20  ;;  %v251_v33 = vld [vmem:[%s240_s12] sm:$0xff]  ;;  %v485_v34 = vld [vmem:[#allocation4 + $0xf8] sm:$0xff]  ;;  %v252_v38 = vld [vmem:[%s240_s12 + $0x8] sm:$0xff] }
  0x38   : > { %318 = vmatprep.subr.mxu0 %v262_v21  ;;  %395 = vmatprep.subr.mxu1 %v264_v22  ;;  %v517_v35 = vld [vmem:[#allocation4 + $0x1f8] sm:$0xff]  ;;  %v484_v39 = vld [vmem:[#allocation4 + $0xf0] sm:$0xff]  ;;  %v483_v43 = vld [vmem:[#allocation4 + $0xe8] sm:$0xff] }
  0x39   : > { %319 = vmatpush1.msra.mxu0 %v261_v23  ;;  %396 = vmatpush1.msra.mxu1 %v263_v24  ;;  %v469_v36 = vld [vmem:[#allocation4 + $0x78] sm:$0xff]  ;;  %v516_v40 = vld [vmem:[#allocation4 + $0x1f0] sm:$0xff]  ;;  %v515_v44 = vld [vmem:[#allocation4 + $0x1e8] sm:$0xff] }
  0x3a   : > { %320 = vmatprep.subr.mxu0 %v258_v25  ;;  %397 = vmatprep.subr.mxu1 %v260_v26  ;;  %v501_v37 = vld [vmem:[#allocation4 + $0x178] sm:$0xff]  ;;  %v468_v41 = vld [vmem:[#allocation4 + $0x70] sm:$0xff]  ;;  %v467_v45 = vld [vmem:[#allocation4 + $0x68] sm:$0xff] }
  0x3b   : > { %321 = vmatpush1.msra.mxu0 %v257_v27  ;;  %398 = vmatpush1.msra.mxu1 %v259_v28  ;;  %v500_v42 = vld [vmem:[#allocation4 + $0x170] sm:$0xff]  ;;  %v499_v46 = vld [vmem:[#allocation4 + $0x168] sm:$0xff]  ;;  %v482_v47 = vld [vmem:[#allocation4 + $0xe0] sm:$0xff] }
  0x3c   : > { %322 = vmatprep.subr.mxu0 %v254_v29  ;;  %399 = vmatprep.subr.mxu1 %v256_v30  ;;  %v514_v48 = vld [vmem:[#allocation4 + $0x1e0] sm:$0xff]  ;;  %v481_v51 = vld [vmem:[#allocation4 + $0xd8] sm:$0xff]  ;;  %v480_v55 = vld [vmem:[#allocation4 + $0xd0] sm:$0xff] }
  0x3d   : > { %323 = vmatpush1.msra.mxu0 %v253_v31  ;;  %400 = vmatpush1.msra.mxu1 %v255_v32  ;;  %v466_v49 = vld [vmem:[#allocation4 + $0x60] sm:$0xff]  ;;  %v513_v52 = vld [vmem:[#allocation4 + $0x1d8] sm:$0xff]  ;;  %v512_v56 = vld [vmem:[#allocation4 + $0x1d0] sm:$0xff] }
  0x3e   : > { %787 = vmatmul.mubr.msk.f32.vlgmr.msra.gmra.mxu0 %vm285_vm0, %v251_v33  ;;  %789 = vmatmul.mubr.msk.f32.vlgmr.msra.gmra.mxu1 %vm285_vm0, %v251_v33  ;;  %v498_v50 = vld [vmem:[#allocation4 + $0x160] sm:$0xff]  ;;  %v465_v53 = vld [vmem:[#allocation4 + $0x58] sm:$0xff]  ;;  %v464_v57 = vld [vmem:[#allocation4 + $0x50] sm:$0xff] }
  0x3f   : > { %362 = vmatprep.mubr.f32.mxu0 %v1009_v0  ;;  %439 = vmatprep.mubr.f32.mxu1 %v1009_v0  ;;  %v497_v54 = vld [vmem:[#allocation4 + $0x158] sm:$0xff]  ;;  %v496_v58 = vld [vmem:[#allocation4 + $0x150] sm:$0xff]  ;;  %v479_v59 = vld [vmem:[#allocation4 + $0xc8] sm:$0xff] }
  0x40   : > { %793 = vmatprep.subr.mxu0 %v485_v34  ;;  %831 = vmatprep.subr.mxu1 %v517_v35  ;;  %v511_v60 = vld [vmem:[#allocation4 + $0x1c8] sm:$0xff]  ;;  %v478_v63 = vld [vmem:[#allocation4 + $0xc0] sm:$0xff]  ;;  %v477_v3 = vld [vmem:[#allocation4 + $0xb8] sm:$0xff] }
  0x41   : > { %794 = vmatpush3.msra.mxu0 %v469_v36  ;;  %832 = vmatpush3.msra.mxu1 %v501_v37  ;;  %v463_v61 = vld [vmem:[#allocation4 + $0x48] sm:$0xff]  ;;  %v510_v0 = vld [vmem:[#allocation4 + $0x1c0] sm:$0xff]  ;;  %v509_v4 = vld [vmem:[#allocation4 + $0x1b8] sm:$0xff] }
  0x42   : > { %788 = vmatmul.mubr.msk.f32.gmra.mxu0 %vm285_vm0, %v252_v38  ;;  %790 = vmatmul.mubr.msk.f32.gmra.mxu1 %vm285_vm0, %v252_v38  ;;  %v495_v62 = vld [vmem:[#allocation4 + $0x148] sm:$0xff]  ;;  %v462_v1 = vld [vmem:[#allocation4 + $0x40] sm:$0xff]  ;;  %v461_v5 = vld [vmem:[#allocation4 + $0x38] sm:$0xff] }
  0x43   : > { %795 = vmatprep.subr.mxu0 %v484_v39  ;;  %833 = vmatprep.subr.mxu1 %v516_v40  ;;  %v494_v2 = vld [vmem:[#allocation4 + $0x140] sm:$0xff]  ;;  %v493_v6 = vld [vmem:[#allocation4 + $0x138] sm:$0xff]  ;;  %v476_v7 = vld [vmem:[#allocation4 + $0xb0] sm:$0xff] }
  0x44   : > { %796 = vmatpush3.msra.mxu0 %v468_v41  ;;  %834 = vmatpush3.msra.mxu1 %v500_v42  ;;  %v508_v8 = vld [vmem:[#allocation4 + $0x1b0] sm:$0xff]  ;;  %v475_v11 = vld [vmem:[#allocation4 + $0xa8] sm:$0xff]  ;;  %v474_v15 = vld [vmem:[#allocation4 + $0xa0] sm:$0xff] }
  0x45   : > { %797 = vmatprep.subr.mxu0 %v483_v43  ;;  %835 = vmatprep.subr.mxu1 %v515_v44  ;;  %v460_v9 = vld [vmem:[#allocation4 + $0x30] sm:$0xff]  ;;  %v507_v12 = vld [vmem:[#allocation4 + $0x1a8] sm:$0xff]  ;;  %v506_v16 = vld [vmem:[#allocation4 + $0x1a0] sm:$0xff] }
  0x46   : > { %798 = vmatpush3.msra.mxu0 %v467_v45  ;;  %836 = vmatpush3.msra.mxu1 %v499_v46  ;;  %v492_v10 = vld [vmem:[#allocation4 + $0x130] sm:$0xff]  ;;  %v459_v13 = vld [vmem:[#allocation4 + $0x28] sm:$0xff]  ;;  %v458_v17 = vld [vmem:[#allocation4 + $0x20] sm:$0xff] }
  0x47   : > { %799 = vmatprep.subr.mxu0 %v482_v47  ;;  %837 = vmatprep.subr.mxu1 %v514_v48  ;;  %v491_v14 = vld [vmem:[#allocation4 + $0x128] sm:$0xff]  ;;  %v490_v18 = vld [vmem:[#allocation4 + $0x120] sm:$0xff]  ;;  %v473_v19 = vld [vmem:[#allocation4 + $0x98] sm:$0xff] }
  0x48   : > { %800 = vmatpush3.msra.mxu0 %v466_v49  ;;  %838 = vmatpush3.msra.mxu1 %v498_v50  ;;  %v505_v20 = vld [vmem:[#allocation4 + $0x198] sm:$0xff]  ;;  %v472_v23 = vld [vmem:[#allocation4 + $0x90] sm:$0xff]  ;;  %v471_v27 = vld [vmem:[#allocation4 + $0x88] sm:$0xff] }
  0x49   : > { %801 = vmatprep.subr.mxu0 %v481_v51  ;;  %839 = vmatprep.subr.mxu1 %v513_v52  ;;  %v457_v21 = vld [vmem:[#allocation4 + $0x18] sm:$0xff]  ;;  %v504_v24 = vld [vmem:[#allocation4 + $0x190] sm:$0xff]  ;;  %v503_v28 = vld [vmem:[#allocation4 + $0x188] sm:$0xff] }
  0x4a   : > { %802 = vmatpush3.msra.mxu0 %v465_v53  ;;  %840 = vmatpush3.msra.mxu1 %v497_v54  ;;  %v489_v22 = vld [vmem:[#allocation4 + $0x118] sm:$0xff]  ;;  %v456_v25 = vld [vmem:[#allocation4 + $0x10] sm:$0xff]  ;;  %v455_v29 = vld [vmem:[#allocation4 + $0x8] sm:$0xff] }
  0x4b   : > { %803 = vmatprep.subr.mxu0 %v480_v55  ;;  %841 = vmatprep.subr.mxu1 %v512_v56  ;;  %v488_v26 = vld [vmem:[#allocation4 + $0x110] sm:$0xff]  ;;  %v487_v30 = vld [vmem:[#allocation4 + $0x108] sm:$0xff]  ;;  %v470_v31 = vld [vmem:[#allocation4 + $0x80] sm:$0xff] }
  0x4c   : > { %804 = vmatpush3.msra.mxu0 %v464_v57  ;;  %842 = vmatpush3.msra.mxu1 %v496_v58  ;;  %v502_v32 = vld [vmem:[#allocation4 + $0x180] sm:$0xff] }
  0x4d   : > { %805 = vmatprep.subr.mxu0 %v479_v59  ;;  %843 = vmatprep.subr.mxu1 %v511_v60  ;;  %v454_v33 = vld [vmem:[#allocation4] sm:$0xff] }
  0x4e   : > { %806 = vmatpush3.msra.mxu0 %v463_v61  ;;  %844 = vmatpush3.msra.mxu1 %v495_v62  ;;  %v486_v34 = vld [vmem:[#allocation4 + $0x100] sm:$0xff] }
  0x4f   : > { %807 = vmatprep.subr.mxu0 %v478_v63  ;;  %845 = vmatprep.subr.mxu1 %v510_v0 }
  0x50   : > { %808 = vmatpush3.msra.mxu0 %v462_v1  ;;  %846 = vmatpush3.msra.mxu1 %v494_v2 }
  0x51   : > { %809 = vmatprep.subr.mxu0 %v477_v3  ;;  %847 = vmatprep.subr.mxu1 %v509_v4 }
  0x52   : > { %810 = vmatpush3.msra.mxu0 %v461_v5  ;;  %848 = vmatpush3.msra.mxu1 %v493_v6 }
  0x53   : > { %811 = vmatprep.subr.mxu0 %v476_v7  ;;  %849 = vmatprep.subr.mxu1 %v508_v8 }
  0x54   : > { %812 = vmatpush3.msra.mxu0 %v460_v9  ;;  %850 = vmatpush3.msra.mxu1 %v492_v10 }
  0x55   : > { %813 = vmatprep.subr.mxu0 %v475_v11  ;;  %851 = vmatprep.subr.mxu1 %v507_v12 }
  0x56   : > { %814 = vmatpush3.msra.mxu0 %v459_v13  ;;  %852 = vmatpush3.msra.mxu1 %v491_v14 }
  0x57   : > { %815 = vmatprep.subr.mxu0 %v474_v15  ;;  %853 = vmatprep.subr.mxu1 %v506_v16 }
  0x58   : > { %816 = vmatpush3.msra.mxu0 %v458_v17  ;;  %854 = vmatpush3.msra.mxu1 %v490_v18 }
  0x59   : > { %817 = vmatprep.subr.mxu0 %v473_v19  ;;  %855 = vmatprep.subr.mxu1 %v505_v20 }
  0x5a   : > { %818 = vmatpush3.msra.mxu0 %v457_v21  ;;  %856 = vmatpush3.msra.mxu1 %v489_v22 }
  0x5b   : > { %819 = vmatprep.subr.mxu0 %v472_v23  ;;  %857 = vmatprep.subr.mxu1 %v504_v24 }
  0x5c   : > { %820 = vmatpush3.msra.mxu0 %v456_v25  ;;  %858 = vmatpush3.msra.mxu1 %v488_v26 }
  0x5d   : > { %821 = vmatprep.subr.mxu0 %v471_v27  ;;  %859 = vmatprep.subr.mxu1 %v503_v28 }
  0x5e   : > { %822 = vmatpush3.msra.mxu0 %v455_v29  ;;  %860 = vmatpush3.msra.mxu1 %v487_v30 }
  0x5f   : > { %823 = vmatprep.subr.mxu0 %v470_v31  ;;  %861 = vmatprep.subr.mxu1 %v502_v32 }
  0x60   : > { %824 = vmatpush3.msra.mxu0 %v454_v33  ;;  %862 = vmatpush3.msra.mxu1 %v486_v34 }
  0xfe   : > { %v358_v35 = vpop.f32.mrf.mxu0  ;;  %v435_v36 = vpop.f32.mrf.mxu1 }
  0xff   : > { %v446_v41 = vmax.f32 %v358_v35, 0.0  ;;  %v448_v42 = vmax.f32 %v435_v36, 0.0 }
 0x100   : > { %v360_v37 = vpop.f32.mrf.mxu0  ;;  %v437_v38 = vpop.f32.mrf.mxu1 }
 0x101   : > { %v447_v39 = vmax.f32 %v360_v37, 0.0  ;;  %v449_v40 = vmax.f32 %v437_v38, 0.0 }
 0x102   : > { %v364_v43 = vpop.f32.mrf.mxu0  ;;  %v441_v44 = vpop.f32.mrf.mxu1 }
 0x103   : > { %582 = vmatprep.mubr.f32.mxu0 %v447_v39  ;;  %657 = vmatprep.mubr.f32.mxu1 %v449_v40  ;;  %v450_v49 = vmax.f32 %v364_v43, 0.0  ;;  %v452_v50 = vmax.f32 %v441_v44, 0.0 }
 0x104   : > { %v366_v45 = vpop.f32.mrf.mxu0  ;;  %v443_v46 = vpop.f32.mrf.mxu1  ;;  %583 = vmatmul.mubr.f32.vlgmr.msra.gmra.mxu0 %v446_v41  ;;  %658 = vmatmul.mubr.f32.vlgmr.msra.gmra.mxu1 %v448_v42 }
 0x105   : > { %v451_v47 = vmax.f32 %v366_v45, 0.0  ;;  %v453_v48 = vmax.f32 %v443_v46, 0.0 }
 0x107   : > { %587 = vmatprep.mubr.f32.mxu0 %v451_v47  ;;  %662 = vmatprep.mubr.f32.mxu1 %v453_v48 }
 0x108   : > { %588 = vmatmul.mubr.f32.gmra.mxu0 %v450_v49  ;;  %663 = vmatmul.mubr.f32.gmra.mxu1 %v452_v50 }
 0x1c4   : > { %v825_v51 = vpop.f32.mrf.mxu0  ;;  %v863_v52 = vpop.f32.mrf.mxu1 }
 0x1c6   : > { %v826_v53 = vpop.f32.mrf.mxu0  ;;  %v864_v54 = vpop.f32.mrf.mxu1 }
 0x1c7   : > { %v827_v55 = vadd.f32 %v826_v53, %v825_v51  ;;  %v865_v56 = vadd.f32 %v864_v54, %v863_v52 }
 0x1c8   : > { %v828_v57 = vpop.f32.mrf.mxu0  ;;  %v866_v58 = vpop.f32.mrf.mxu1 }
 0x1c9   : > { %v660_v59 = vadd.f32 %v865_v56, %v827_v55 }
 0x1ca   : > { %v829_v60 = vpop.f32.mrf.mxu0  ;;  %v867_v61 = vpop.f32.mrf.mxu1 }
 0x1cb   : > { %668 = vst [vmem:[%s249_s18] sm:$0xff] %v660_v59  ;;  %v830_v62 = vadd.f32 %v829_v60, %v828_v57  ;;  %v868_v63 = vadd.f32 %v867_v61, %v866_v58 }
 0x1cd   : > { %v665_v0 = vadd.f32 %v868_v63, %v830_v62 }
 0x1cf   : > { %669 = vst [vmem:[%s249_s18 + $0x8] sm:$0xff] %v665_v0 }
 0x1d0 PF: > { %s15_s14 = sadd.s32 1, %s1001_s14   ;;  %s1140_s12 = smov %s997_s13 }
 0x1d1   : > { %p12_p4 = scmp.ge.s32.totalorder %s15_s14, 4   ;;  %s1141_s13 = smov %s1143_s16 }
 0x1d3   :  { %14 = sbr.rel (!%p12_p4) target bundleno = 3 (0x3), region = 73 }
 0x1d8   :  { %698 = vsyncpa [#allocation3], 1 }
 0x1d9   :  { %700 = vsyncpa [#allocation3 + $0x1], 1 }
 0x1da   :  { %701 = vsyncpa [#allocation5], 1 }

</bundles_post_ra>
